<compile_context>
chip_gen: v6e
topology: v6e:2x2x1
jax: 0.10.0
libtpu: 0.0.40
codegen_flags: <defaults>
</compile_context>

<pallas_src>
import functools

import jax
import jax.numpy as jnp
from jax.experimental import pallas as pl
from jax.experimental.pallas import tpu as pltpu

_LANE = 128
_SUBLANE = 8


def _round_up(x, m):
    return ((x + m - 1) // m) * m


# ---------------------------------------------------------------------------
# Pallas kernel: conv1 -> relu -> conv2 -> relu, + residual, final relu.
# One grid step = one (batch, time-tile). Causal left context is carried in
# persistent VMEM scratches (xwin/hwin) across time tiles.
# ---------------------------------------------------------------------------
def _temporal_block_kernel(x_ref, w1_ref, b1_ref, w2_ref, b2_ref, *rest,
                           seq_tile, ksize, dilation, pad, hist0,
                           has_downsample):
    if has_downsample:
        wd_ref, bd_ref, o_ref, xwin_ref, hwin_ref = rest
    else:
        o_ref, xwin_ref, hwin_ref = rest

    t = pl.program_id(1)
    tl = seq_tile
    off = hist0 - pad                      # first valid history row in the window
    c_in = x_ref.shape[2]
    c_in_p = xwin_ref.shape[1]
    c_out_p = hwin_ref.shape[1]
    cdt = xwin_ref.dtype

    # -- first time tile of each batch: zero the causal history (left pad) ----
    @pl.when(t == 0)
    def _init_history():
        xwin_ref[0:hist0, :] = jnp.zeros((hist0, c_in_p), cdt)
        hwin_ref[0:hist0, :] = jnp.zeros((hist0, c_out_p), cdt)

    # current input tile (already in compute dtype, channels unpadded in HBM);
    # write it lane-padded into the causal window so all matmuls are aligned.
    x_cur = x_ref[0].astype(cdt)                            # (TL, C_in)
    if c_in == c_in_p:
        xwin_ref[hist0:hist0 + tl, :] = x_cur
    else:
        lane_pad = jnp.zeros((tl, c_in_p - c_in), cdt)
        xwin_ref[hist0:hist0 + tl, :] = jnp.concatenate([x_cur, lane_pad], axis=1)

    def gather_taps(win_ref):
        # im2col slab: ksize shifted copies of the window, concatenated along
        # lanes (each piece is a 128-multiple wide -> lane-aligned placement).
        pieces = [win_ref[off + j * dilation: off + j * dilation + tl, :]
                  for j in range(ksize)]
        return pieces[0] if ksize == 1 else jnp.concatenate(pieces, axis=1)

    # ---- conv1 (causal dilated): one K = ksize*C_in_p matmul + bias + ReLU ---
    h1 = jnp.maximum(
        jnp.dot(gather_taps(xwin_ref), w1_ref[...],
                preferred_element_type=jnp.float32) + b1_ref[...], 0.0)
    # dropout1: identity in eval mode
    hwin_ref[hist0:hist0 + tl, :] = h1.astype(cdt)

    # ---- conv2 (causal dilated): one K = ksize*C_out_p matmul + bias + ReLU --
    h2 = jnp.maximum(
        jnp.dot(gather_taps(hwin_ref), w2_ref[...],
                preferred_element_type=jnp.float32) + b2_ref[...], 0.0)
    # dropout2: identity in eval mode

    # ---- residual -----------------------------------------------------------
    x_res = xwin_ref[hist0:hist0 + tl, :]                   # lane-padded current x
    if has_downsample:
        res = jnp.dot(x_res, wd_ref[...],
                      preferred_element_type=jnp.float32) + bd_ref[...]
    else:
        res = x_res.astype(jnp.float32)                     # identity residual

    o_ref[0] = jnp.maximum(h2 + res, 0.0).astype(o_ref.dtype)

    # ---- carry the last `pad` rows of x and h1 to the next time tile --------
    @pl.when(t + 1 < pl.num_programs(1))
    def _carry():
        xwin_ref[off:hist0, :] = xwin_ref[tl + off:tl + hist0, :]
        hwin_ref[off:hist0, :] = hwin_ref[tl + off:tl + hist0, :]


# ---------------------------------------------------------------------------
# Parameter construction (weight-norm folded, like the PyTorch module's init)
# ---------------------------------------------------------------------------
def _fold_weight_norm(v, g):
    # weight_norm: w = g * v / ||v||, norm over (in_channels, kernel) per out-chan.
    norm = jnp.sqrt(jnp.sum(v * v, axis=(1, 2), keepdims=True))
    return g[:, None, None] * v / norm


def init_temporal_block_params(key, n_inputs, n_outputs, kernel_size):
    ks = jax.random.split(key, 8)
    v1 = 0.01 * jax.random.normal(ks[0], (n_outputs, n_inputs, kernel_size), jnp.float32)
    g1 = jax.random.uniform(ks[1], (n_outputs,), jnp.float32, 0.5, 1.5)
    b1 = 0.05 * jax.random.normal(ks[2], (n_outputs,), jnp.float32)
    v2 = 0.01 * jax.random.normal(ks[3], (n_outputs, n_outputs, kernel_size), jnp.float32)
    g2 = jax.random.uniform(ks[4], (n_outputs,), jnp.float32, 0.5, 1.5)
    b2 = 0.05 * jax.random.normal(ks[5], (n_outputs,), jnp.float32)
    params = dict(w1=_fold_weight_norm(v1, g1), b1=b1,
                  w2=_fold_weight_norm(v2, g2), b2=b2,
                  has_downsample=(n_inputs != n_outputs))
    if params["has_downsample"]:
        params["wd"] = 0.01 * jax.random.normal(ks[6], (n_outputs, n_inputs, 1), jnp.float32)
        params["bd"] = 0.05 * jax.random.normal(ks[7], (n_outputs,), jnp.float32)
    return params


# ---------------------------------------------------------------------------
# Wrapper: layout plumbing + pallas_call
# ---------------------------------------------------------------------------
def temporal_block_forward(x_ncl, params, *, kernel_size, stride, dilation, padding,
                           compute_dtype=jnp.bfloat16, time_tile=None, out_dtype=None):
    assert stride == 1, "TCN TemporalBlock uses stride=1"
    assert padding == dilation * (kernel_size - 1) and padding >= 1, \
        "causal residual block requires padding == dilation * (kernel_size - 1) >= 1"

    B, C_in, L = x_ncl.shape
    C_out = params["w1"].shape[0]
    has_downsample = bool(params["has_downsample"])
    out_dtype = x_ncl.dtype if out_dtype is None else jnp.dtype(out_dtype)

    csize = jnp.dtype(compute_dtype).itemsize
    osize = jnp.dtype(out_dtype).itemsize
    sub = _SUBLANE * max(1, 4 // csize)          # sublane pack: 8 (f32), 16 (bf16)

    C_in_p = _round_up(C_in, _LANE)
    C_out_p = _round_up(C_out, _LANE)
    hist0 = _round_up(padding, sub)              # aligned causal-history region

    # ---- device-aware VMEM budget (v5e/v6e: 128 MiB, v7x: 64 MiB) -----------
    try:
        vmem_cap = int(getattr(pltpu.get_tpu_info(), "vmem_capacity_bytes", 64 << 20))
    except Exception:
        vmem_cap = 64 << 20
    vmem_budget = int(0.75 * vmem_cap)           # ~96 MiB on 128 MiB parts, ~48 MiB on v7x

    if time_tile is None:
        time_tile = 2048 if vmem_cap >= (100 << 20) else 1024

    min_tl = max(_round_up(padding, sub), sub)   # history carry needs TL >= padding
    TL = max(_round_up(min(time_tile, L), sub), min_tl)

    def vmem_estimate(tl):
        return (2 * tl * C_in * csize                               # x blocks (x2 pipeline bufs)
                + 2 * tl * C_out_p * osize                          # out blocks (x2)
                + (hist0 + tl) * (C_in_p + C_out_p) * csize         # causal windows
                + tl * kernel_size * (C_in_p + C_out_p) * csize     # im2col slabs
                + 2 * kernel_size * (C_in_p + C_out_p) * C_out_p * csize  # w1,w2 (x2 bufs)
                + (2 * C_in_p * C_out_p * csize if has_downsample else 0)
                + 6 * tl * C_out_p * 4)                             # f32 temps
    while TL > min_tl and vmem_estimate(TL) > vmem_budget:
        TL = max(min_tl, _round_up(TL // 2, sub))

    Lp = _round_up(L, TL)
    n_t = Lp // TL

    # ---- PyTorch OIK conv weights -> im2col matmul weights, biases as (1, O) -
    w1 = jnp.transpose(params["w1"], (2, 1, 0))                      # (K, I, O)
    w1 = jnp.pad(w1, ((0, 0), (0, C_in_p - C_in), (0, C_out_p - C_out)))
    w1 = w1.reshape(kernel_size * C_in_p, C_out_p).astype(compute_dtype)
    w2 = jnp.transpose(params["w2"], (2, 1, 0))
    w2 = jnp.pad(w2, ((0, 0), (0, C_out_p - C_out), (0, C_out_p - C_out)))
    w2 = w2.reshape(kernel_size * C_out_p, C_out_p).astype(compute_dtype)
    b1 = jnp.pad(params["b1"], (0, C_out_p - C_out))[None, :].astype(jnp.float32)
    b2 = jnp.pad(params["b2"], (0, C_out_p - C_out))[None, :].astype(jnp.float32)

    # (B, C, L) -> (B, L, C) in the compute dtype; only time is padded in HBM —
    # channels stay unpadded so per-tile input DMA is contiguous and minimal.
    # TODO(synk): accept/produce a time-major layout at the block boundary to
    #             avoid these transpose round trips when the model permits it.
    x = jnp.transpose(x_ncl, (0, 2, 1)).astype(compute_dtype)
    x = jnp.pad(x, ((0, 0), (0, Lp - L), (0, 0)))

    operands = [x, w1, b1, w2, b2]
    in_specs = [
        pl.BlockSpec((1, TL, C_in), lambda b, t: (b, t, 0)),
        pl.BlockSpec((kernel_size * C_in_p, C_out_p), lambda b, t: (0, 0)),
        pl.BlockSpec((1, C_out_p), lambda b, t: (0, 0)),
        pl.BlockSpec((kernel_size * C_out_p, C_out_p), lambda b, t: (0, 0)),
        pl.BlockSpec((1, C_out_p), lambda b, t: (0, 0)),
    ]
    if has_downsample:
        wd = jnp.transpose(params["wd"][:, :, 0], (1, 0))
        wd = jnp.pad(wd, ((0, C_in_p - C_in), (0, C_out_p - C_out))).astype(compute_dtype)
        bd = jnp.pad(params["bd"], (0, C_out_p - C_out))[None, :].astype(jnp.float32)
        operands += [wd, bd]
        in_specs += [pl.BlockSpec((C_in_p, C_out_p), lambda b, t: (0, 0)),
                     pl.BlockSpec((1, C_out_p), lambda b, t: (0, 0))]

    kernel = functools.partial(
        _temporal_block_kernel, seq_tile=TL, ksize=kernel_size, dilation=dilation,
        pad=padding, hist0=hist0, has_downsample=has_downsample)

    # Advisory cost estimate so XLA can schedule the surrounding ops around us.
    flops = 2 * B * Lp * kernel_size * (C_in_p + C_out_p) * C_out_p
    if has_downsample:
        flops += 2 * B * Lp * C_in_p * C_out_p
    in_bytes = sum(int(o.size) * o.dtype.itemsize for o in operands)
    out_bytes = B * Lp * C_out_p * osize
    cost = pl.CostEstimate(flops=int(flops), transcendentals=0,
                           bytes_accessed=int(in_bytes + out_bytes))

    out = pl.pallas_call(
        kernel,
        out_shape=jax.ShapeDtypeStruct((B, Lp, C_out_p), out_dtype),
        grid_spec=pltpu.PrefetchScalarGridSpec(
            num_scalar_prefetch=0,
            grid=(B, n_t),                      # time innermost: sequential carry
            in_specs=in_specs,
            out_specs=pl.BlockSpec((1, TL, C_out_p), lambda b, t: (b, t, 0)),
            scratch_shapes=[
                pltpu.VMEM((hist0 + TL, C_in_p), compute_dtype),   # x window + history
                pltpu.VMEM((hist0 + TL, C_out_p), compute_dtype),  # h1 window + history
            ]),
        compiler_params=pltpu.CompilerParams(
            dimension_semantics=("parallel", "arbitrary"),
            vmem_limit_bytes=int(vmem_budget)),
        cost_estimate=cost,
    )(*operands)

    out = out[:, :L, :C_out]                     # strip time/channel padding
    return jnp.transpose(out, (0, 2, 1))         # back to NCL (B, C_out, L)


# ---------------------------------------------------------------------------
# Pure-JAX reference (mirrors the PyTorch forward) for verification
# ---------------------------------------------------------------------------
def _reference_forward(x_ncl, params, *, kernel_size, stride, dilation, padding):
    def conv1d(x, w, b, dil, pad):
        out = jax.lax.conv_general_dilated(
            x, w, window_strides=(stride,), padding=[(pad, pad)],
            rhs_dilation=(dil,), dimension_numbers=("NCH", "OIH", "NCH"))
        return out + b[None, :, None]

    h = conv1d(x_ncl, params["w1"], params["b1"], dilation, padding)[:, :, :-padding]
    h = jnp.maximum(h, 0.0)
    h = conv1d(h, params["w2"], params["b2"], dilation, padding)[:, :, :-padding]
    h = jnp.maximum(h, 0.0)
    if params["has_downsample"]:
        res = conv1d(x_ncl, params["wd"], params["bd"], 1, 0)
    else:
        res = x_ncl
    return jnp.maximum(h + res, 0.0)


if __name__ == "__main__":
    def run_case(name, key, *, B, n_in, n_out, L, ksize, dilation, time_tile,
                 compute_dtype, atol, rtol):
        stride = 1
        padding = (ksize - 1) * dilation
        kx, kp = jax.random.split(key)
        x = jax.random.normal(kx, (B, n_in, L), jnp.float32)       # PyTorch NCL layout
        params = init_temporal_block_params(kp, n_in, n_out, ksize)
        out = temporal_block_forward(x, params, kernel_size=ksize, stride=stride,
                                     dilation=dilation, padding=padding,
                                     compute_dtype=compute_dtype, time_tile=time_tile)
        out = jax.block_until_ready(out)
        ref = _reference_forward(x, params, kernel_size=ksize, stride=stride,
                                 dilation=dilation, padding=padding)
        assert out.shape == (B, n_out, L), (name, out.shape)
        err = float(jnp.max(jnp.abs(out - ref)))
        assert jnp.allclose(out, ref, atol=atol, rtol=rtol), (name, err)

    key = jax.random.PRNGKey(0)
    k1, k2, k3 = jax.random.split(key, 3)

    # Downsample residual (C_in != C_out), two time tiles (exercises the causal
    # history carry), f32 compute for tight agreement with the reference.
    run_case("downsample_f32", k1, B=2, n_in=8, n_out=16, L=16, ksize=3, dilation=2,
             time_tile=8, compute_dtype=jnp.float32, atol=1e-4, rtol=1e-4)

    # Same configuration on the bf16 MXU fast path (f32 accumulation), two tiles.
    run_case("downsample_bf16", k2, B=2, n_in=8, n_out=16, L=32, ksize=3, dilation=2,
             time_tile=8, compute_dtype=jnp.bfloat16, atol=2e-2, rtol=2e-2)

    # Identity residual (C_in == C_out), single time tile, auto time_tile.
    run_case("identity_f32", k3, B=2, n_in=16, n_out=16, L=32, ksize=3, dilation=1,
             time_tile=None, compute_dtype=jnp.float32, atol=1e-4, rtol=1e-4)

    print("KERNEL_OK")
</pallas_src>

<mosaic_0001>
module attributes {stable_mosaic.version = 11 : i64} {
  func.func @_temporal_block_kernel(%arg0: i32, %arg1: i32, %arg2: memref<1x8x8xf32, #tpu.memory_space<vmem>>, %arg3: memref<384x128xf32, #tpu.memory_space<vmem>>, %arg4: memref<1x128xf32, #tpu.memory_space<vmem>>, %arg5: memref<384x128xf32, #tpu.memory_space<vmem>>, %arg6: memref<1x128xf32, #tpu.memory_space<vmem>>, %arg7: memref<128x128xf32, #tpu.memory_space<vmem>>, %arg8: memref<1x128xf32, #tpu.memory_space<vmem>>, %arg9: memref<1x8x128xf32, #tpu.memory_space<vmem>>, %arg10: memref<16x128xf32, #tpu.memory_space<vmem>>, %arg11: memref<16x128xf32, #tpu.memory_space<vmem>>) attributes {dimension_semantics = [#tpu.dimension_semantics<parallel>, #tpu.dimension_semantics<arbitrary>], iteration_bounds = array<i64: 2, 2>, scalar_prefetch = 0 : i64, scratch_operands = 2 : i64, tpu.core_type = #tpu.core_type<tc>, window_params = [{transform_indices = @transform_0, window_bounds = array<i64: 1, 8, 8>}, {pipeline_mode = #tpu.pipeline_mode<synchronous>, transform_indices = @transform_1, window_bounds = array<i64: 384, 128>}, {pipeline_mode = #tpu.pipeline_mode<synchronous>, transform_indices = @transform_2, window_bounds = array<i64: 1, 128>}, {pipeline_mode = #tpu.pipeline_mode<synchronous>, transform_indices = @transform_3, window_bounds = array<i64: 384, 128>}, {pipeline_mode = #tpu.pipeline_mode<synchronous>, transform_indices = @transform_4, window_bounds = array<i64: 1, 128>}, {pipeline_mode = #tpu.pipeline_mode<synchronous>, transform_indices = @transform_5, window_bounds = array<i64: 128, 128>}, {pipeline_mode = #tpu.pipeline_mode<synchronous>, transform_indices = @transform_6, window_bounds = array<i64: 1, 128>}, {transform_indices = @transform_7, window_bounds = array<i64: 1, 8, 128>}]} {
    %c0_i32 = arith.constant 0 : i32
    %0 = arith.cmpi eq, %arg1, %c0_i32 : i32
    %1 = arith.extui %0 : i1 to i32
    %c0_i32_0 = arith.constant 0 : i32
    %2 = arith.cmpi ne, %1, %c0_i32_0 : i32
    scf.if %2 {
      %cst_40 = arith.constant 0.000000e+00 : f32
      %47 = vector.broadcast %cst_40 : f32 to vector<8x128xf32>
      %c0_41 = arith.constant 0 : index
      %c0_42 = arith.constant 0 : index
      %48 = vector.load %arg10[%c0_41, %c0_42] : memref<16x128xf32, #tpu.memory_space<vmem>>, vector<8x128xf32>
      tpu.vector_store %arg10[%c0_41, %c0_42], %47 {strides = array<i32>} : memref<16x128xf32, #tpu.memory_space<vmem>>, vector<8x128xf32>,
      %cst_43 = arith.constant 0.000000e+00 : f32
      %49 = vector.broadcast %cst_43 : f32 to vector<8x128xf32>
      %c0_44 = arith.constant 0 : index
      %c0_45 = arith.constant 0 : index
      %50 = vector.load %arg11[%c0_44, %c0_45] : memref<16x128xf32, #tpu.memory_space<vmem>>, vector<8x128xf32>
      tpu.vector_store %arg11[%c0_44, %c0_45], %49 {strides = array<i32>} : memref<16x128xf32, #tpu.memory_space<vmem>>, vector<8x128xf32>,
    } else {
    }
    %c0 = arith.constant 0 : index
    %c0_1 = arith.constant 0 : index
    %c0_2 = arith.constant 0 : index
    %3 = vector.load %arg2[%c0, %c0_1, %c0_2] : memref<1x8x8xf32, #tpu.memory_space<vmem>>, vector<1x8x8xf32>
    %4 = vector.shape_cast %3 : vector<1x8x8xf32> to vector<8x8xf32>
    %cst = arith.constant 0.000000e+00 : f32
    %5 = vector.broadcast %cst : f32 to vector<8x120xf32>
    %6 = tpu.concatenate %4, %5 in 1 : vector<8x8xf32>, vector<8x120xf32> -> vector<8x128xf32>
    %c8 = arith.constant 8 : index
    %c0_3 = arith.constant 0 : index
    %7 = vector.load %arg10[%c8, %c0_3] : memref<16x128xf32, #tpu.memory_space<vmem>>, vector<8x128xf32>
    tpu.vector_store %arg10[%c8, %c0_3], %6 {strides = array<i32>} : memref<16x128xf32, #tpu.memory_space<vmem>>, vector<8x128xf32>,
    %c4 = arith.constant 4 : index
    %c0_4 = arith.constant 0 : index
    %8 = vector.load %arg10[%c4, %c0_4] : memref<16x128xf32, #tpu.memory_space<vmem>>, vector<8x128xf32>
    %c6 = arith.constant 6 : index
    %c0_5 = arith.constant 0 : index
    %9 = vector.load %arg10[%c6, %c0_5] : memref<16x128xf32, #tpu.memory_space<vmem>>, vector<8x128xf32>
    %c8_6 = arith.constant 8 : index
    %c0_7 = arith.constant 0 : index
    %10 = vector.load %arg10[%c8_6, %c0_7] : memref<16x128xf32, #tpu.memory_space<vmem>>, vector<8x128xf32>
    %11 = tpu.concatenate %8, %9, %10 in 1 : vector<8x128xf32>, vector<8x128xf32>, vector<8x128xf32> -> vector<8x384xf32>
    %c0_8 = arith.constant 0 : index
    %c0_9 = arith.constant 0 : index
    %12 = vector.load %arg3[%c0_8, %c0_9] : memref<384x128xf32, #tpu.memory_space<vmem>>, vector<384x128xf32>
    %cst_10 = arith.constant dense<0.000000e+00> : vector<8x128xf32>
    %13 = tpu.matmul %11, %12, %cst_10 {dimension_numbers = #tpu.dot_dimension_numbers<[1], [0], [0], [1], [0, 0, 1, 1], [], []>} : vector<8x384xf32>, vector<384x128xf32>, vector<8x128xf32> -> vector<8x128xf32>
    %c0_11 = arith.constant 0 : index
    %c0_12 = arith.constant 0 : index
    %14 = vector.load %arg4[%c0_11, %c0_12] : memref<1x128xf32, #tpu.memory_space<vmem>>, vector<1x128xf32>
    %15 = vector.broadcast %14 : vector<1x128xf32> to vector<8x128xf32>
    %16 = arith.addf %13, %15 : vector<8x128xf32>
    %cst_13 = arith.constant 0.000000e+00 : f32
    %17 = vector.broadcast %cst_13 : f32 to vector<8x128xf32>
    %18 = arith.maximumf %16, %17 : vector<8x128xf32>
    %c8_14 = arith.constant 8 : index
    %c0_15 = arith.constant 0 : index
    %19 = vector.load %arg11[%c8_14, %c0_15] : memref<16x128xf32, #tpu.memory_space<vmem>>, vector<8x128xf32>
    tpu.vector_store %arg11[%c8_14, %c0_15], %18 {strides = array<i32>} : memref<16x128xf32, #tpu.memory_space<vmem>>, vector<8x128xf32>,
    %c4_16 = arith.constant 4 : index
    %c0_17 = arith.constant 0 : index
    %20 = vector.load %arg11[%c4_16, %c0_17] : memref<16x128xf32, #tpu.memory_space<vmem>>, vector<8x128xf32>
    %c6_18 = arith.constant 6 : index
    %c0_19 = arith.constant 0 : index
    %21 = vector.load %arg11[%c6_18, %c0_19] : memref<16x128xf32, #tpu.memory_space<vmem>>, vector<8x128xf32>
    %c8_20 = arith.constant 8 : index
    %c0_21 = arith.constant 0 : index
    %22 = vector.load %arg11[%c8_20, %c0_21] : memref<16x128xf32, #tpu.memory_space<vmem>>, vector<8x128xf32>
    %23 = tpu.concatenate %20, %21, %22 in 1 : vector<8x128xf32>, vector<8x128xf32>, vector<8x128xf32> -> vector<8x384xf32>
    %c0_22 = arith.constant 0 : index
    %c0_23 = arith.constant 0 : index
    %24 = vector.load %arg5[%c0_22, %c0_23] : memref<384x128xf32, #tpu.memory_space<vmem>>, vector<384x128xf32>
    %cst_24 = arith.constant dense<0.000000e+00> : vector<8x128xf32>
    %25 = tpu.matmul %23, %24, %cst_24 {dimension_numbers = #tpu.dot_dimension_numbers<[1], [0], [0], [1], [0, 0, 1, 1], [], []>} : vector<8x384xf32>, vector<384x128xf32>, vector<8x128xf32> -> vector<8x128xf32>
    %c0_25 = arith.constant 0 : index
    %c0_26 = arith.constant 0 : index
    %26 = vector.load %arg6[%c0_25, %c0_26] : memref<1x128xf32, #tpu.memory_space<vmem>>, vector<1x128xf32>
    %27 = vector.broadcast %26 : vector<1x128xf32> to vector<8x128xf32>
    %28 = arith.addf %25, %27 : vector<8x128xf32>
    %cst_27 = arith.constant 0.000000e+00 : f32
    %29 = vector.broadcast %cst_27 : f32 to vector<8x128xf32>
    %30 = arith.maximumf %28, %29 : vector<8x128xf32>
    %c8_28 = arith.constant 8 : index
    %c0_29 = arith.constant 0 : index
    %31 = vector.load %arg10[%c8_28, %c0_29] : memref<16x128xf32, #tpu.memory_space<vmem>>, vector<8x128xf32>
    %c0_30 = arith.constant 0 : index
    %c0_31 = arith.constant 0 : index
    %32 = vector.load %arg7[%c0_30, %c0_31] : memref<128x128xf32, #tpu.memory_space<vmem>>, vector<128x128xf32>
    %cst_32 = arith.constant dense<0.000000e+00> : vector<8x128xf32>
    %33 = tpu.matmul %31, %32, %cst_32 {dimension_numbers = #tpu.dot_dimension_numbers<[1], [0], [0], [1], [0, 0, 1, 1], [], []>} : vector<8x128xf32>, vector<128x128xf32>, vector<8x128xf32> -> vector<8x128xf32>
    %c0_33 = arith.constant 0 : index
    %c0_34 = arith.constant 0 : index
    %34 = vector.load %arg8[%c0_33, %c0_34] : memref<1x128xf32, #tpu.memory_space<vmem>>, vector<1x128xf32>
    %35 = vector.broadcast %34 : vector<1x128xf32> to vector<8x128xf32>
    %36 = arith.addf %33, %35 : vector<8x128xf32>
    %37 = arith.addf %30, %36 : vector<8x128xf32>
    %cst_35 = arith.constant 0.000000e+00 : f32
    %38 = vector.broadcast %cst_35 : f32 to vector<8x128xf32>
    %39 = arith.maximumf %37, %38 : vector<8x128xf32>
    %c0_36 = arith.constant 0 : index
    %c0_37 = arith.constant 0 : index
    %c0_38 = arith.constant 0 : index
    %40 = vector.load %arg9[%c0_36, %c0_37, %c0_38] : memref<1x8x128xf32, #tpu.memory_space<vmem>>, vector<1x8x128xf32>
    %41 = vector.shape_cast %40 : vector<1x8x128xf32> to vector<8x128xf32>
    %42 = vector.shape_cast %39 : vector<8x128xf32> to vector<1x8x128xf32>
    tpu.vector_store %arg9[%c0_36, %c0_37, %c0_38], %42 {strides = array<i32>} : memref<1x8x128xf32, #tpu.memory_space<vmem>>, vector<1x8x128xf32>,
    %c1_i32 = arith.constant 1 : i32
    %43 = arith.addi %arg1, %c1_i32 : i32
    %c2_i32 = arith.constant 2 : i32
    %44 = arith.cmpi slt, %43, %c2_i32 : i32
    %45 = arith.extui %44 : i1 to i32
    %c0_i32_39 = arith.constant 0 : i32
    %46 = arith.cmpi ne, %45, %c0_i32_39 : i32
    scf.if %46 {
      %c12 = arith.constant 12 : index
      %c0_40 = arith.constant 0 : index
      %47 = vector.load %arg10[%c12, %c0_40] : memref<16x128xf32, #tpu.memory_space<vmem>>, vector<4x128xf32>
      %c4_41 = arith.constant 4 : index
      %c0_42 = arith.constant 0 : index
      %48 = vector.load %arg10[%c4_41, %c0_42] : memref<16x128xf32, #tpu.memory_space<vmem>>, vector<4x128xf32>
      tpu.vector_store %arg10[%c4_41, %c0_42], %47 {strides = array<i32>} : memref<16x128xf32, #tpu.memory_space<vmem>>, vector<4x128xf32>,
      %c12_43 = arith.constant 12 : index
      %c0_44 = arith.constant 0 : index
      %49 = vector.load %arg11[%c12_43, %c0_44] : memref<16x128xf32, #tpu.memory_space<vmem>>, vector<4x128xf32>
      %c4_45 = arith.constant 4 : index
      %c0_46 = arith.constant 0 : index
      %50 = vector.load %arg11[%c4_45, %c0_46] : memref<16x128xf32, #tpu.memory_space<vmem>>, vector<4x128xf32>
      tpu.vector_store %arg11[%c4_45, %c0_46], %49 {strides = array<i32>} : memref<16x128xf32, #tpu.memory_space<vmem>>, vector<4x128xf32>,
    } else {
    }
    return
  }
  func.func @transform_0(%arg0: i32, %arg1: i32) -> (i32, i32, i32) {
    %c0_i32 = arith.constant 0 : i32
    %c0_i32_0 = arith.constant 0 : i32
    return %arg0, %arg1, %c0_i32 : i32, i32, i32
  }
  func.func @transform_1(%arg0: i32, %arg1: i32) -> (i32, i32) {
    %c0_i32 = arith.constant 0 : i32
    %c0_i32_0 = arith.constant 0 : i32
    %c0_i32_1 = arith.constant 0 : i32
    return %c0_i32, %c0_i32_0 : i32, i32
  }
  func.func @transform_2(%arg0: i32, %arg1: i32) -> (i32, i32) {
    %c0_i32 = arith.constant 0 : i32
    %c0_i32_0 = arith.constant 0 : i32
    %c0_i32_1 = arith.constant 0 : i32
    return %c0_i32, %c0_i32_0 : i32, i32
  }
  func.func @transform_3(%arg0: i32, %arg1: i32) -> (i32, i32) {
    %c0_i32 = arith.constant 0 : i32
    %c0_i32_0 = arith.constant 0 : i32
    %c0_i32_1 = arith.constant 0 : i32
    return %c0_i32, %c0_i32_0 : i32, i32
  }
  func.func @transform_4(%arg0: i32, %arg1: i32) -> (i32, i32) {
    %c0_i32 = arith.constant 0 : i32
    %c0_i32_0 = arith.constant 0 : i32
    %c0_i32_1 = arith.constant 0 : i32
    return %c0_i32, %c0_i32_0 : i32, i32
  }
  func.func @transform_5(%arg0: i32, %arg1: i32) -> (i32, i32) {
    %c0_i32 = arith.constant 0 : i32
    %c0_i32_0 = arith.constant 0 : i32
    %c0_i32_1 = arith.constant 0 : i32
    return %c0_i32, %c0_i32_0 : i32, i32
  }
  func.func @transform_6(%arg0: i32, %arg1: i32) -> (i32, i32) {
    %c0_i32 = arith.constant 0 : i32
    %c0_i32_0 = arith.constant 0 : i32
    %c0_i32_1 = arith.constant 0 : i32
    return %c0_i32, %c0_i32_0 : i32, i32
  }
  func.func @transform_7(%arg0: i32, %arg1: i32) -> (i32, i32, i32) {
    %c0_i32 = arith.constant 0 : i32
    %c0_i32_0 = arith.constant 0 : i32
    return %arg0, %arg1, %c0_i32 : i32, i32, i32
  }
}

</mosaic_0001>

<bundles_post_ra>
// kernel: tpu_custom_call.1
= control target key start
LH: loop header
LB: loop body
LE: loop exit
PB: predicated region body
PF: predicated region fallthrough
CT: control target
= control target key end

     0   :  { %s1846_s0 = inlined_call_operand.vmem [shape: f32[2,16,8], index: 0, kind: input, shape index: {}]   ;;  %s1847_s1 = inlined_call_operand.hbm [shape: f32[384,128], index: 1, kind: input, shape index: {}]   ;;  %s1848_s2 = inlined_call_operand.vmem [shape: f32[1,128], index: 2, kind: input, shape index: {}]   ;;  %s1849_s3 = inlined_call_operand.hbm [shape: f32[384,128], index: 3, kind: input, shape index: {}]   ;;  %s1850_s4 = inlined_call_operand.vmem [shape: f32[1,128], index: 4, kind: input, shape index: {}]   ;;  %s1851_s5 = inlined_call_operand.hbm [shape: f32[128,128], index: 5, kind: input, shape index: {}]   ;;  %s1852_s6 = inlined_call_operand.vmem [shape: f32[1,128], index: 6, kind: input, shape index: {}]   ;;  %s1853_s7 = inlined_call_operand.hbm [shape: f32[2,16,128], index: 7, kind: output, shape index: {}]  }
   0x1   :  { %1857 = sst [smem:[#allocation17_spill]] %s1846_s0 }
   0x2   :  { %12 = vsyncpa [#allocation5], 0 }
   0x3   :  { %13 = vsyncpa [#allocation8], 0 }
   0x4   :  { %14 = vsyncpa [#allocation6], 0 }
   0x5   :  { %16 = vsyncpa [#allocation6 + $0x1], 0  ;;  %s1574_s24 = smov 0   ;;  %s1576_s25 = smov 0  }
   0x6   :  { %s1578_s26 = smov 0   ;;  %s1580_s27 = smov 0  }
   0x7   :  { %s1582_s28 = smov 0   ;;  %s1584_s29 = smov 0  }
   0x8   :  { %s1586_s30 = smov 0   ;;  %s1588_s8 = smov 0  }
   0x9 LB: > { %1858 = sst [smem:[#allocation14_spill]] %s1519_s30  ;;  %s986_s9 = sadd.s32 4294967295, %s1523_s8   ;;  %s1523_s8 = sphi %s1588_s8, %s22_s8   ;;  %s1519_s30 = sphi %s1586_s30, %s1870_s30   ;;  %s1515_s29 = sphi %s1584_s29, %s1875_s29   ;;  %s1511_s28 = sphi %s1582_s28, %s1868_s28   ;;  %s1507_s27 = sphi %s1580_s27, %s1874_s27   ;;  %s1503_s26 = sphi %s1578_s26, %s1873_s26   ;;  %s1499_s25 = sphi %s1576_s25, %s1872_s25   ;;  %s1495_s24 = sphi %s1574_s24, %s1871_s24  }
   0xa   : > { %s987_s10 = sadd.s32 4294967294, %s1523_s8   ;;  %s31_s11 = sadd.s32 1, %s1515_s29 }
   0xb   : > { %s34_s12 = sadd.s32 1, %s1519_s30  ;;  %p32_p0 = scmp.ge.s32.totalorder %s31_s11, 2 }
   0xc   : > { %s197_s13 = sadd.s32 1, %s1503_s26  ;;  %p207_p1 = scmp.ne.s32.totalorder %s1503_s26, %s1499_s25 }
   0xd   : > { %p208_p2 = scmp.eq.s32.totalorder %s986_s9, 3  ;;  %s1877_s11 = smov (%p32_p0, %s31_s11), 0 }
   0xe   : > { %1859 = sst [smem:[#allocation15_spill]] %s1877_s11  ;;  %s1879_s12 = smov (!%p32_p0, %s34_s12), %s1519_s30 }
   0xf   : > { %s193_s14 = ssub.s32 %s1515_s29, %s1877_s11  ;;  %p1626_p3 = por %p208_p2, %p207_p1 }
  0x10   : > { %p36_p4 = scmp.ge.s32.totalorder %s1879_s12, 2  ;;  %p213_p5 = scmp.ne.s32.totalorder %s1499_s25, %s1495_s24 }
  0x11   : > { %p214_p6 = scmp.eq.s32.totalorder %s987_s10, 3  ;;  %p988_p7 = scmp.ge.s32.totalorder %s1523_s8, 1 }
  0x12   : > { %s1881_s12 = smov (%p36_p4, %s1879_s12), 0  ;;  %p221_p9 = scmp.lt.s32.totalorder %s1523_s8, 5 }
  0x13   : > { %1861 = sst [smem:[#allocation16_spill]] %s1881_s12  ;;  %p1635_p8 = por %p214_p6, %p213_p5 }
  0x14   : > { %s192_s17 = ssub.s32 %s1519_s30, %s1881_s12  ;;  %p1642_p10 = pnand %p988_p7, %p221_p9 }
  0x15   : > { %s1862_s16 = scalar_select %p1635_p8, 1, 0 }
  0x16   : > { %s194_s18 = sor.u32 %s193_s14, %s192_s17  ;;  %p1646_p12 = scmp.eq.s32.totalorder %s986_s9, 0 }
  0x17   : > { %p195_p11 = scmp.eq.s32.totalorder %s194_s18, 0  ;;  %p1250_p13 = pneg %p1642_p10 }
  0x18   : > { %s1525_s23 = smov [#allocation7]  }
  0x19   : > { %s1653_s21 = scalar_select %p195_p11, %s1503_s26, %s197_s13  }
  0x1a   : > { %p1657_p0 = pnand %p1646_p12, %p1250_p13  ;;  %s249_s10 = sshll.u32 %s1525_s23, 4  ;;  %s250_s10 = int_to_ptr.vmem [resolvable:$true] %s249_s10 }
  0x1b   : > { %s1356_s9 = scalar_lea.vmem %s250_s10, 6144  ;;  %p1364_p6 = scmp.lt.s32.totalorder %s250_s10, %s250_s10 }
  0x1c   : > { %p1347_p1 = pneg %p1657_p0  ;;  %p1357_p2 = scmp.ne.s32.totalorder %s250_s10, %s1356_s9 }
  0x1d   : > { %p1365_p7 = scmp.lt.s32.totalorder %s1356_s9, %s1356_s9 }
  0x1e   : > { %p1359_p4 = pnand %p1357_p2, %p1347_p1 }
  0x1f   : > { %p1366_p9 = por %p1365_p7, %p1364_p6 }
  0x20   : > { %p1360_p5 = pneg %p1359_p4 }
  0x22   : > { %p1367_p11 = pnand %p1366_p9, %p1360_p5 }
  0x24   : > { %1370 = shalt.err (!%p1367_p11)
}
  0x25   : > { %s1526_s13 = smov 128   ;;  %s1527_s14 = smov 8  }
  0x26   : > { %1256 = dma.hbm_to_vmem [thread:$0]  (!%p1657_p0), %s1849_s3, 6144, %s250_s10, [#allocation8], %s1526_s13, %s1526_s13, %s1527_s14  }
  0x27   : > { %s1528_s23 = smov [#allocation4]   ;;  %s1529_s11 = smov [#allocation9]  }
  0x28   : > { %s233_s12 = sshll.u32 %s1528_s23, 4  ;;  %s265_s30 = sshll.u32 %s1529_s11, 4  ;;  %s234_s12 = int_to_ptr.vmem [resolvable:$true] %s233_s12  ;;  %s266_s30 = int_to_ptr.vmem [resolvable:$true] %s265_s30 }
  0x29   : > { %s1382_s9 = scalar_lea.vmem %s234_s12, 6144  ;;  %p1390_p5 = scmp.lt.s32.totalorder %s234_s12, %s234_s12 }
  0x2a   : > { %p1383_p13 = scmp.ne.s32.totalorder %s234_s12, %s1382_s9  ;;  %p1391_p6 = scmp.lt.s32.totalorder %s1382_s9, %s1382_s9 }
  0x2c   : > { %p1385_p2 = pnand %p1383_p13, %p1347_p1  ;;  %p1392_p7 = por %p1391_p6, %p1390_p5 }
  0x2e   : > { %p1386_p4 = pneg %p1385_p2 }
  0x30   : > { %p1393_p9 = pnand %p1392_p7, %p1386_p4 }
  0x32   : > { %1396 = shalt.err (!%p1393_p9)
}
  0x33   : > { %1253 = dma.hbm_to_vmem [thread:$0]  (!%p1657_p0), %s1847_s1, 6144, %s234_s12, [#allocation5], %s1526_s13, %s1526_s13, %s1527_s14  }
  0x34   : > { %s1408_s17 = scalar_lea.vmem %s266_s30, 2048  ;;  %p1416_p8 = scmp.lt.s32.totalorder %s266_s30, %s266_s30 }
  0x35   : > { %p1409_p11 = scmp.ne.s32.totalorder %s266_s30, %s1408_s17  ;;  %p1417_p5 = scmp.lt.s32.totalorder %s1408_s17, %s1408_s17 }
  0x37   : > { %p1411_p13 = pnand %p1409_p11, %p1347_p1  ;;  %p1418_p4 = por %p1417_p5, %p1416_p8 }
  0x39   : > { %p1412_p2 = pneg %p1411_p13 }
  0x3b   : > { %p1419_p6 = pnand %p1418_p4, %p1412_p2 }
  0x3d   : > { %1422 = shalt.err (!%p1419_p6)
}
  0x3e   : > { %1259 = dma.hbm_to_vmem [thread:$0]  (!%p1657_p0), %s1851_s5, 2048, %s266_s30, [#allocation8], %s1526_s13, %s1526_s13, %s1527_s14  }
  0x3f   : > { %295 = sbr.rel (%p1642_p10) target bundleno = 590 (0x24e), region = 48 }
  0x44   : > { %1482 = dma.done.wait (%p1646_p12), [#allocation5], 6144  }
  0x45   : > { %1484 = vsyncadd (%p1646_p12), [#allocation5], 4294961152 }
  0x46   : > { %1486 = dma.done.wait (%p1646_p12), [#allocation8], 8192  }
  0x47   : > { %1488 = vsyncadd (%p1646_p12), [#allocation8], 4294959104  ;;  %s335_s30 = sand.u32 1, %s1499_s25   ;;  %p338_p8 = scmp.lt.s32.totalorder %s1511_s28, 1 }
  0x48   : > { %s1710_s12 = sshll.u32 %s335_s30, 3  ;;  %p340_p10 = scmp.lt.s32.totalorder %s1507_s27, 1 }
  0x49   : > { %s339_s19 = scalar_select %p338_p8, %s1511_s28, 1 }
  0x4a   : > { %s341_s22 = scalar_select %p340_p10, %s1507_s27, 1 }
  0x4b   : > { %s998_s13 = sshll.u32 %s339_s19, 1  ;;  %s1866_s0 = sld [smem:[#allocation17_spill]] }
  0x4c   : > { %s343_s14 = sadd.s32 %s998_s13, %s341_s22  ;;  %s337_s17 = scalar_lea.vmem [#allocation10], %s1710_s12 }
  0x4d   : > { %s999_s9 = sshll.u32 %s343_s14, 3  ;;  %p1000_p12 = scmp.ne.s32.totalorder %s1507_s27, 0 }
  0x4f   : > { %349 = sbr.rel (%p1000_p12) target bundleno = 86 (0x56), region = 64 }
  0x51   : > { %s1718_s11 = scalar_lea.vmem %s1866_s0, %s999_s9 }
  0x54   : > { %v1530_v0 = vmov 0.0  }
  0x55   : > { %350 = vst [vmem:[#allocation2] sm:$0xff] %v1530_v0  ;;  %351 = vst [vmem:[#allocation3] sm:$0xff] %v1530_v0 }
  0x56 PF: > { %v390_v1 = vld [vmem:[#allocation4 + $0xf8] sm:$0xff]  ;;  %v389_v3 = vld [vmem:[#allocation4 + $0xf0] sm:$0xff]  ;;  %v1531_v5 = vmov 0.0   ;;  %v388_v6 = vld [vmem:[#allocation4 + $0xe8] sm:$0xff]  ;;  %vm1532_vm0 = vmmov 0   ;;  %vm353_vm1 = vcmask 64512  }
  0x57   : > { %v374_v2 = vld [vmem:[#allocation4 + $0x78] sm:$0xff]  ;;  %1010 = vmatprep.subr.mxu0 %v390_v1  ;;  %v373_v4 = vld [vmem:[#allocation4 + $0x70] sm:$0xff]  ;;  %1131 = vmatprep.subr.mxu1 %v1531_v5  ;;  %v372_v8 = vld [vmem:[#allocation4 + $0x68] sm:$0xff]  ;;  %s852_s19 = sadd.s32 1, %s1507_s27 }
  0x58   : > { %1011 = vmatpush3.msra.mxu0 %v374_v2  ;;  %v406_v7 = vld [vmem:[#allocation4 + $0x178] sm:$0xff]  ;;  %1163 = vmatprep.mubr.msk.f32.mxu1 %vm1532_vm0, %v1531_v5  ;;  %v405_v9 = vld [vmem:[#allocation4 + $0x170] sm:$0xff]  ;;  %v387_v10 = vld [vmem:[#allocation4 + $0xe0] sm:$0xff]  ;;  %p1004_p0 = scmp.ge.s32.totalorder %s852_s19, 2 }
  0x59   : > { %1012 = vmatprep.subr.mxu0 %v389_v3  ;;  %1132 = vmatpush3.msra.mxu1 %v406_v7  ;;  %v404_v11 = vld [vmem:[#allocation4 + $0x168] sm:$0xff]  ;;  %v371_v12 = vld [vmem:[#allocation4 + $0x60] sm:$0xff]  ;;  %v386_v13 = vld [vmem:[#allocation4 + $0xd8] sm:$0xff] }
  0x5a   : > { %1013 = vmatpush3.msra.mxu0 %v373_v4  ;;  %1133 = vmatprep.subr.mxu1 %v1531_v5  ;;  %v403_v14 = vld [vmem:[#allocation4 + $0x160] sm:$0xff]  ;;  %v370_v15 = vld [vmem:[#allocation4 + $0x58] sm:$0xff]  ;;  %v385_v16 = vld [vmem:[#allocation4 + $0xd0] sm:$0xff] }
  0x5b   : > { %1014 = vmatprep.subr.mxu0 %v388_v6  ;;  %1134 = vmatpush3.msra.mxu1 %v405_v9  ;;  %v402_v17 = vld [vmem:[#allocation4 + $0x158] sm:$0xff]  ;;  %v369_v18 = vld [vmem:[#allocation4 + $0x50] sm:$0xff]  ;;  %v384_v19 = vld [vmem:[#allocation4 + $0xc8] sm:$0xff] }
  0x5c   : > { %1015 = vmatpush3.msra.mxu0 %v372_v8  ;;  %1135 = vmatprep.subr.mxu1 %v1531_v5  ;;  %v401_v20 = vld [vmem:[#allocation4 + $0x150] sm:$0xff]  ;;  %v368_v21 = vld [vmem:[#allocation4 + $0x48] sm:$0xff]  ;;  %v383_v22 = vld [vmem:[#allocation4 + $0xc0] sm:$0xff] }
  0x5d   : > { %1016 = vmatprep.subr.mxu0 %v387_v10  ;;  %1136 = vmatpush3.msra.mxu1 %v404_v11  ;;  %v400_v23 = vld [vmem:[#allocation4 + $0x148] sm:$0xff]  ;;  %v367_v24 = vld [vmem:[#allocation4 + $0x40] sm:$0xff]  ;;  %v382_v25 = vld [vmem:[#allocation4 + $0xb8] sm:$0xff] }
  0x5e   : > { %1017 = vmatpush3.msra.mxu0 %v371_v12  ;;  %1137 = vmatprep.subr.mxu1 %v1531_v5  ;;  %v399_v26 = vld [vmem:[#allocation4 + $0x140] sm:$0xff]  ;;  %v366_v27 = vld [vmem:[#allocation4 + $0x38] sm:$0xff]  ;;  %v381_v29 = vld [vmem:[#allocation4 + $0xb0] sm:$0xff] }
  0x5f   : > { %1018 = vmatprep.subr.mxu0 %v386_v13  ;;  %1138 = vmatpush3.msra.mxu1 %v403_v14  ;;  %v1732_v28 = vld [vmem:[%s1718_s11] sm:$0xff]  ;;  %v398_v30 = vld [vmem:[#allocation4 + $0x138] sm:$0xff]  ;;  %v365_v32 = vld [vmem:[#allocation4 + $0x30] sm:$0xff] }
  0x60   : > { %1019 = vmatpush3.msra.mxu0 %v370_v15  ;;  %1139 = vmatprep.subr.mxu1 %v1531_v5  ;;  %v354_v31 = vsel %vm353_vm1, %v1732_v28, 0.0  ;;  %v380_v33 = vld [vmem:[#allocation4 + $0xa8] sm:$0xff]  ;;  %v397_v34 = vld [vmem:[#allocation4 + $0x130] sm:$0xff]  ;;  %v379_v36 = vld [vmem:[#allocation4 + $0xa0] sm:$0xff] }
  0x61   : > { %1020 = vmatprep.subr.mxu0 %v385_v16  ;;  %1140 = vmatpush3.msra.mxu1 %v402_v17  ;;  %355 = vst [vmem:[#allocation2 + $0x8] sm:$0xff] %v354_v31  ;;  %v364_v35 = vld [vmem:[#allocation4 + $0x28] sm:$0xff]  ;;  %v363_v38 = vld [vmem:[#allocation4 + $0x20] sm:$0xff]  ;;  %v378_v39 = vld [vmem:[#allocation4 + $0x98] sm:$0xff] }
  0x62   : > { %1021 = vmatpush3.msra.mxu0 %v369_v18  ;;  %1141 = vmatprep.subr.mxu1 %v1531_v5  ;;  %v396_v37 = vld [vmem:[#allocation4 + $0x128] sm:$0xff]  ;;  %v395_v40 = vld [vmem:[#allocation4 + $0x120] sm:$0xff]  ;;  %v362_v41 = vld [vmem:[#allocation4 + $0x18] sm:$0xff] }
  0x63   : > { %1022 = vmatprep.subr.mxu0 %v384_v19  ;;  %1142 = vmatpush3.msra.mxu1 %v401_v20  ;;  %v377_v42 = vld [vmem:[#allocation4 + $0x90] sm:$0xff]  ;;  %v394_v43 = vld [vmem:[#allocation4 + $0x118] sm:$0xff]  ;;  %v376_v45 = vld [vmem:[#allocation4 + $0x88] sm:$0xff] }
  0x64   : > { %1023 = vmatpush3.msra.mxu0 %v368_v21  ;;  %1143 = vmatprep.subr.mxu1 %v1531_v5  ;;  %v361_v44 = vld [vmem:[#allocation4 + $0x10] sm:$0xff]  ;;  %v360_v47 = vld [vmem:[#allocation4 + $0x8] sm:$0xff]  ;;  %v375_v49 = vld [vmem:[#allocation4 + $0x80] sm:$0xff] }
  0x65   : > { %1024 = vmatprep.subr.mxu0 %v383_v22  ;;  %1144 = vmatpush3.msra.mxu1 %v400_v23  ;;  %v393_v48 = vld [vmem:[#allocation4 + $0x110] sm:$0xff]  ;;  %v359_v50 = vld [vmem:[#allocation4] sm:$0xff]  ;;  %v392_v51 = vld [vmem:[#allocation4 + $0x108] sm:$0xff] }
  0x66   : > { %1025 = vmatpush3.msra.mxu0 %v367_v24  ;;  %1145 = vmatprep.subr.mxu1 %v1531_v5  ;;  %v391_v53 = vld [vmem:[#allocation4 + $0x100] sm:$0xff]  ;;  %v590_v54 = vld [vmem:[#allocation7 + $0xf8] sm:$0xff]  ;;  %v589_v57 = vld [vmem:[#allocation7 + $0xf0] sm:$0xff] }
  0x67   : > { %1026 = vmatprep.subr.mxu0 %v382_v25  ;;  %1146 = vmatpush3.msra.mxu1 %v399_v26  ;;  %v574_v55 = vld [vmem:[#allocation7 + $0x78] sm:$0xff]  ;;  %v573_v58 = vld [vmem:[#allocation7 + $0x70] sm:$0xff]  ;;  %v588_v60 = vld [vmem:[#allocation7 + $0xe8] sm:$0xff] }
  0x68   : > { %1027 = vmatpush3.msra.mxu0 %v366_v27  ;;  %1147 = vmatprep.subr.mxu1 %v1531_v5  ;;  %v357_v46 = vld [vmem:[#allocation2 + $0x6] sm:$0xff]  ;;  %v606_v56 = vld [vmem:[#allocation7 + $0x178] sm:$0xff]  ;;  %v605_v59 = vld [vmem:[#allocation7 + $0x170] sm:$0xff] }
  0x69   : > { %1028 = vmatprep.subr.mxu0 %v381_v29  ;;  %1148 = vmatpush3.msra.mxu1 %v398_v30  ;;  %v356_v52 = vld [vmem:[#allocation2 + $0x4] sm:$0xff]  ;;  %v586_v2 = vld [vmem:[#allocation7 + $0xd8] sm:$0xff]  ;;  %v585_v6 = vld [vmem:[#allocation7 + $0xd0] sm:$0xff] }
  0x6a   : > { %1029 = vmatpush3.msra.mxu0 %v365_v32  ;;  %1149 = vmatprep.subr.mxu1 %v1531_v5  ;;  %v572_v61 = vld [vmem:[#allocation7 + $0x68] sm:$0xff]  ;;  %v587_v63 = vld [vmem:[#allocation7 + $0xe0] sm:$0xff]  ;;  %v570_v3 = vld [vmem:[#allocation7 + $0x58] sm:$0xff] }
  0x6b   : > { %1030 = vmatprep.subr.mxu0 %v380_v33  ;;  %1150 = vmatpush3.msra.mxu1 %v397_v34  ;;  %v604_v62 = vld [vmem:[#allocation7 + $0x168] sm:$0xff]  ;;  %v571_v0 = vld [vmem:[#allocation7 + $0x60] sm:$0xff]  ;;  %v602_v4 = vld [vmem:[#allocation7 + $0x158] sm:$0xff] }
  0x6c   : > { %1031 = vmatpush3.msra.mxu0 %v364_v35  ;;  %1151 = vmatprep.subr.mxu1 %v1531_v5  ;;  %v603_v1 = vld [vmem:[#allocation7 + $0x160] sm:$0xff]  ;;  %v569_v7 = vld [vmem:[#allocation7 + $0x50] sm:$0xff]  ;;  %v584_v9 = vld [vmem:[#allocation7 + $0xc8] sm:$0xff] }
  0x6d   : > { %1032 = vmatprep.subr.mxu0 %v379_v36  ;;  %1152 = vmatpush3.msra.mxu1 %v396_v37  ;;  %v601_v8 = vld [vmem:[#allocation7 + $0x150] sm:$0xff]  ;;  %v600_v10 = vld [vmem:[#allocation7 + $0x148] sm:$0xff]  ;;  %v599_v11 = vld [vmem:[#allocation7 + $0x140] sm:$0xff] }
  0x6e   : > { %1033 = vmatpush3.msra.mxu0 %v363_v38  ;;  %1153 = vmatprep.subr.mxu1 %v1531_v5  ;;  %v598_v12 = vld [vmem:[#allocation7 + $0x138] sm:$0xff]  ;;  %v597_v13 = vld [vmem:[#allocation7 + $0x130] sm:$0xff]  ;;  %v568_v14 = vld [vmem:[#allocation7 + $0x48] sm:$0xff] }
  0x6f   : > { %1034 = vmatprep.subr.mxu0 %v378_v39  ;;  %1154 = vmatpush3.msra.mxu1 %v395_v40  ;;  %v596_v15 = vld [vmem:[#allocation7 + $0x128] sm:$0xff]  ;;  %v583_v16 = vld [vmem:[#allocation7 + $0xc0] sm:$0xff]  ;;  %v582_v19 = vld [vmem:[#allocation7 + $0xb8] sm:$0xff] }
  0x70   : > { %1035 = vmatpush3.msra.mxu0 %v362_v41  ;;  %1155 = vmatprep.subr.mxu1 %v1531_v5  ;;  %v567_v17 = vld [vmem:[#allocation7 + $0x40] sm:$0xff]  ;;  %v566_v20 = vld [vmem:[#allocation7 + $0x38] sm:$0xff]  ;;  %v581_v22 = vld [vmem:[#allocation7 + $0xb0] sm:$0xff] }
  0x71   : > { %1036 = vmatprep.subr.mxu0 %v377_v42  ;;  %1156 = vmatpush3.msra.mxu1 %v394_v43  ;;  %v595_v18 = vld [vmem:[#allocation7 + $0x120] sm:$0xff]  ;;  %v594_v21 = vld [vmem:[#allocation7 + $0x118] sm:$0xff]  ;;  %v565_v23 = vld [vmem:[#allocation7 + $0x30] sm:$0xff] }
  0x72   : > { %1037 = vmatpush3.msra.mxu0 %v361_v44  ;;  %1157 = vmatprep.subr.mxu1 %v1531_v5  ;;  %v593_v24 = vld [vmem:[#allocation7 + $0x110] sm:$0xff]  ;;  %v580_v25 = vld [vmem:[#allocation7 + $0xa8] sm:$0xff]  ;;  %v579_v29 = vld [vmem:[#allocation7 + $0xa0] sm:$0xff] }
  0x73   : > { %1038 = vmatprep.subr.mxu0 %v376_v45  ;;  %478 = vmatprep.mubr.f32.mxu0 %v357_v46  ;;  %v564_v26 = vld [vmem:[#allocation7 + $0x28] sm:$0xff]  ;;  %v563_v30 = vld [vmem:[#allocation7 + $0x20] sm:$0xff]  ;;  %v578_v32 = vld [vmem:[#allocation7 + $0x98] sm:$0xff] }
  0x74   : > { %1039 = vmatpush3.msra.mxu0 %v360_v47  ;;  %1158 = vmatpush3.msra.mxu1 %v393_v48  ;;  %v592_v27 = vld [vmem:[#allocation7 + $0x108] sm:$0xff]  ;;  %v591_v31 = vld [vmem:[#allocation7 + $0x100] sm:$0xff]  ;;  %v562_v33 = vld [vmem:[#allocation7 + $0x18] sm:$0xff] }
  0x75   : > { %1040 = vmatprep.subr.mxu0 %v375_v49  ;;  %1159 = vmatprep.subr.mxu1 %v1531_v5  ;;  %v577_v34 = vld [vmem:[#allocation7 + $0x90] sm:$0xff]  ;;  %v576_v36 = vld [vmem:[#allocation7 + $0x88] sm:$0xff]  ;;  %v575_v38 = vld [vmem:[#allocation7 + $0x80] sm:$0xff] }
  0x76   : > { %1041 = vmatpush3.msra.mxu0 %v359_v50  ;;  %1160 = vmatpush3.msra.mxu1 %v392_v51  ;;  %v561_v35 = vld [vmem:[#allocation7 + $0x10] sm:$0xff]  ;;  %v560_v37 = vld [vmem:[#allocation7 + $0x8] sm:$0xff]  ;;  %v559_v39 = vld [vmem:[#allocation7] sm:$0xff] }
  0x77   : > { %479 = vmatmul.mubr.f32.vlgmr.msra.gmra.mxu0 %v356_v52  ;;  %1161 = vmatprep.subr.mxu1 %v1531_v5  ;;  %v1001_v42 = vld [vmem:[%s1848_s2] ss:$0 sm:$0xff]  ;;  %v771_v51 = vld [vmem:[#allocation9 + $0x78] sm:$0xff]  ;;  %v770_v52 = vld [vmem:[#allocation9 + $0x70] sm:$0xff] }
  0x78   : > { %1162 = vmatpush3.msra.mxu1 %v391_v53  ;;  %1062 = vmatprep.subr.mxu0 %v590_v54  ;;  %v769_v53 = vld [vmem:[#allocation9 + $0x68] sm:$0xff]  ;;  %v768_v54 = vld [vmem:[#allocation9 + $0x60] sm:$0xff] }
  0x79   : > { %1343 = vmatmul.mubr.msk.f32.vlgmr.msra.gmra.mxu1 %vm353_vm1, %v1732_v28  ;;  %1166 = vmatprep.subr.mxu1 %v1531_v5 }
  0x7a   : > { %1063 = vmatpush3.msra.mxu0 %v574_v55  ;;  %1167 = vmatpush3.msra.mxu1 %v606_v56  ;;  %v767_v55 = vld [vmem:[#allocation9 + $0x58] sm:$0xff]  ;;  %v766_v56 = vld [vmem:[#allocation9 + $0x50] sm:$0xff] }
  0x7b   : > { %1064 = vmatprep.subr.mxu0 %v589_v57  ;;  %1168 = vmatprep.subr.mxu1 %v1531_v5  ;;  %v765_v57 = vld [vmem:[#allocation9 + $0x48] sm:$0xff] }
  0x7c   : > { %1065 = vmatpush3.msra.mxu0 %v573_v58  ;;  %1169 = vmatpush3.msra.mxu1 %v605_v59  ;;  %v764_v58 = vld [vmem:[#allocation9 + $0x40] sm:$0xff]  ;;  %v763_v59 = vld [vmem:[#allocation9 + $0x38] sm:$0xff] }
  0x7d   : > { %1066 = vmatprep.subr.mxu0 %v588_v60  ;;  %1170 = vmatprep.subr.mxu1 %v1531_v5  ;;  %v762_v60 = vld [vmem:[#allocation9 + $0x30] sm:$0xff] }
  0x7e   : > { %1067 = vmatpush3.msra.mxu0 %v572_v61  ;;  %1171 = vmatpush3.msra.mxu1 %v604_v62  ;;  %v761_v61 = vld [vmem:[#allocation9 + $0x28] sm:$0xff]  ;;  %v760_v62 = vld [vmem:[#allocation9 + $0x20] sm:$0xff] }
  0x7f   : > { %1068 = vmatprep.subr.mxu0 %v587_v63  ;;  %1172 = vmatprep.subr.mxu1 %v1531_v5  ;;  %v759_v63 = vld [vmem:[#allocation9 + $0x18] sm:$0xff] }
  0x80   : > { %1069 = vmatpush3.msra.mxu0 %v571_v0  ;;  %1173 = vmatpush3.msra.mxu1 %v603_v1  ;;  %v758_v0 = vld [vmem:[#allocation9 + $0x10] sm:$0xff]  ;;  %v757_v1 = vld [vmem:[#allocation9 + $0x8] sm:$0xff] }
  0x81   : > { %1070 = vmatprep.subr.mxu0 %v586_v2  ;;  %1174 = vmatprep.subr.mxu1 %v1531_v5  ;;  %v756_v2 = vld [vmem:[#allocation9] sm:$0xff] }
  0x82   : > { %1071 = vmatpush3.msra.mxu0 %v570_v3  ;;  %1175 = vmatpush3.msra.mxu1 %v602_v4 }
  0x83   : > { %1072 = vmatprep.subr.mxu0 %v585_v6  ;;  %1176 = vmatprep.subr.mxu1 %v1531_v5 }
  0x84   : > { %1073 = vmatpush3.msra.mxu0 %v569_v7  ;;  %1177 = vmatpush3.msra.mxu1 %v601_v8 }
  0x85   : > { %1074 = vmatprep.subr.mxu0 %v584_v9  ;;  %1178 = vmatprep.subr.mxu1 %v1531_v5  ;;  %v1002_v9 = vld [vmem:[%s1850_s4] ss:$0 sm:$0xff] }
  0x86   : > { %1198 = vmatprep.mubr.msk.f32.mxu1 %vm1532_vm0, %v1531_v5  ;;  %1179 = vmatpush3.msra.mxu1 %v600_v10 }
  0x87   : > { %1180 = vmatprep.subr.mxu1 %v1531_v5  ;;  %1075 = vmatpush3.msra.mxu0 %v568_v14 }
  0x88   : > { %1181 = vmatpush3.msra.mxu1 %v599_v11  ;;  %1076 = vmatprep.subr.mxu0 %v583_v16 }
  0x89   : > { %1182 = vmatprep.subr.mxu1 %v1531_v5  ;;  %1077 = vmatpush3.msra.mxu0 %v567_v17 }
  0x8a   : > { %1183 = vmatpush3.msra.mxu1 %v598_v12  ;;  %1078 = vmatprep.subr.mxu0 %v582_v19 }
  0x8b   : > { %1184 = vmatprep.subr.mxu1 %v1531_v5  ;;  %1079 = vmatpush3.msra.mxu0 %v566_v20 }
  0x8c   : > { %1185 = vmatpush3.msra.mxu1 %v597_v13  ;;  %1080 = vmatprep.subr.mxu0 %v581_v22 }
  0x8d   : > { %1186 = vmatprep.subr.mxu1 %v1531_v5  ;;  %1081 = vmatpush3.msra.mxu0 %v565_v23 }
  0x8e   : > { %1187 = vmatpush3.msra.mxu1 %v596_v15  ;;  %1082 = vmatprep.subr.mxu0 %v580_v25 }
  0x8f   : > { %1188 = vmatprep.subr.mxu1 %v1531_v5  ;;  %1083 = vmatpush3.msra.mxu0 %v564_v26 }
  0x90   : > { %1189 = vmatpush3.msra.mxu1 %v595_v18  ;;  %1084 = vmatprep.subr.mxu0 %v579_v29 }
  0x91   : > { %1190 = vmatprep.subr.mxu1 %v1531_v5  ;;  %1085 = vmatpush3.msra.mxu0 %v563_v30 }
  0x92   : > { %1191 = vmatpush3.msra.mxu1 %v594_v21  ;;  %1086 = vmatprep.subr.mxu0 %v578_v32 }
  0x93   : > { %1192 = vmatprep.subr.mxu1 %v1531_v5  ;;  %1087 = vmatpush3.msra.mxu0 %v562_v33 }
  0x94   : > { %1193 = vmatpush3.msra.mxu1 %v593_v24  ;;  %1088 = vmatprep.subr.mxu0 %v577_v34 }
  0x95   : > { %1194 = vmatprep.subr.mxu1 %v1531_v5  ;;  %1089 = vmatpush3.msra.mxu0 %v561_v35 }
  0x96   : > { %1195 = vmatpush3.msra.mxu1 %v592_v27  ;;  %1090 = vmatprep.subr.mxu0 %v576_v36 }
  0x97   : > { %1196 = vmatprep.subr.mxu1 %v1531_v5  ;;  %1091 = vmatpush3.msra.mxu0 %v560_v37 }
  0x98   : > { %1197 = vmatpush3.msra.mxu1 %v591_v31  ;;  %1092 = vmatprep.subr.mxu0 %v575_v38 }
  0x99   : > { %1093 = vmatpush3.msra.mxu0 %v559_v39 }
  0x9a   : > { %1201 = vmatprep.subr.mxu0 %v1531_v5 }
 0x137   : > { %v1042_v40 = vpop.f32.mrf.mxu0 }
 0x139   : > { %v1043_v41 = vpop.f32.mrf.mxu0  ;;  %v550_v43 = vpop.f32.mrf.mxu1 }
 0x13a   : > { %v1044_v44 = vadd.f32 %v1043_v41, %v1042_v40 }
 0x13b   : > { %v1165_v45 = vpop.f32.mrf.mxu1 }
 0x13c   : > { %v481_v46 = vadd.f32 %v1044_v44, %v1001_v42 }
 0x13e   : > { %v551_v47 = vadd.f32 %v550_v43, %v481_v46 }
 0x140   : > { %v554_v48 = vmax.f32 %v551_v47, 0.0 }
 0x142   : > { %555 = vst [vmem:[#allocation3 + $0x8] sm:$0xff] %v554_v48  ;;  %1199 = vmatmul.mubr.f32.vlgmr.msra.gmra.mxu1 %v554_v48 }
 0x149   : > { %v557_v49 = vld [vmem:[#allocation3 + $0x6] sm:$0xff] }
 0x14a   : > { %v556_v50 = vld [vmem:[#allocation3 + $0x4] sm:$0xff]  ;;  %678 = vmatprep.mubr.f32.mxu0 %v557_v49 }
 0x14b   : > { %679 = vmatmul.mubr.f32.vlgmr.msra.gmra.mxu0 %v556_v50 }
 0x14c   : > { %1202 = vmatpush3.msra.mxu0 %v771_v51  ;;  %1233 = vmatprep.mubr.msk.f32.mxu0 %vm1532_vm0, %v1531_v5 }
 0x14d   : > { %1203 = vmatprep.subr.mxu0 %v1531_v5 }
 0x14e   : > { %1204 = vmatpush3.msra.mxu0 %v770_v52 }
 0x14f   : > { %1205 = vmatprep.subr.mxu0 %v1531_v5 }
 0x150   : > { %1206 = vmatpush3.msra.mxu0 %v769_v53 }
 0x151   : > { %1207 = vmatprep.subr.mxu0 %v1531_v5 }
 0x152   : > { %1208 = vmatpush3.msra.mxu0 %v768_v54 }
 0x153   : > { %1209 = vmatprep.subr.mxu0 %v1531_v5 }
 0x154   : > { %1210 = vmatpush3.msra.mxu0 %v767_v55 }
 0x155   : > { %1211 = vmatprep.subr.mxu0 %v1531_v5 }
 0x156   : > { %1212 = vmatpush3.msra.mxu0 %v766_v56 }
 0x157   : > { %1213 = vmatprep.subr.mxu0 %v1531_v5 }
 0x158   : > { %1214 = vmatpush3.msra.mxu0 %v765_v57 }
 0x159   : > { %1215 = vmatprep.subr.mxu0 %v1531_v5 }
 0x15a   : > { %1216 = vmatpush3.msra.mxu0 %v764_v58 }
 0x15b   : > { %1217 = vmatprep.subr.mxu0 %v1531_v5 }
 0x15c   : > { %1218 = vmatpush3.msra.mxu0 %v763_v59 }
 0x15d   : > { %1219 = vmatprep.subr.mxu0 %v1531_v5 }
 0x15e   : > { %1220 = vmatpush3.msra.mxu0 %v762_v60 }
 0x15f   : > { %1221 = vmatprep.subr.mxu0 %v1531_v5 }
 0x160   : > { %1222 = vmatpush3.msra.mxu0 %v761_v61 }
 0x161   : > { %1223 = vmatprep.subr.mxu0 %v1531_v5 }
 0x162   : > { %1224 = vmatpush3.msra.mxu0 %v760_v62 }
 0x163   : > { %1225 = vmatprep.subr.mxu0 %v1531_v5 }
 0x164   : > { %1226 = vmatpush3.msra.mxu0 %v759_v63 }
 0x165   : > { %1227 = vmatprep.subr.mxu0 %v1531_v5 }
 0x166   : > { %1228 = vmatpush3.msra.mxu0 %v758_v0 }
 0x167   : > { %1229 = vmatprep.subr.mxu0 %v1531_v5 }
 0x168   : > { %1230 = vmatpush3.msra.mxu0 %v757_v1 }
 0x169   : > { %1231 = vmatprep.subr.mxu0 %v1531_v5  ;;  %v1003_v5 = vld [vmem:[%s1852_s6] ss:$0 sm:$0xff] }
 0x16a   : > { %1232 = vmatpush3.msra.mxu0 %v756_v2 }
 0x16b   : > { %1344 = vmatmul.mubr.msk.f32.vlgmr.msra.gmra.mxu0 %vm353_vm1, %v1732_v28 }
 0x202   : > { %v750_v3 = vpop.f32.mrf.mxu1 }
 0x204   : > { %v1200_v4 = vpop.f32.mrf.mxu1 }
 0x20b   : > { %v1094_v6 = vpop.f32.mrf.mxu0 }
 0x20d   : > { %v1095_v7 = vpop.f32.mrf.mxu0 }
 0x20e   : > { %v1096_v8 = vadd.f32 %v1095_v7, %v1094_v6 }
 0x210   : > { %v681_v10 = vadd.f32 %v1096_v8, %v1002_v9 }
 0x212   : > { %v751_v11 = vadd.f32 %v750_v3, %v681_v10 }
 0x214   : > { %v754_v13 = vmax.f32 %v751_v11, 0.0 }
 0x22b   : > { %v845_v12 = vpop.f32.mrf.mxu0 }
 0x22c   : > { %v846_v28 = vadd.f32 %v1003_v5, %v845_v12 }
 0x22d   : > { %v1235_v14 = vpop.f32.mrf.mxu0 }
 0x22e   : > { %v849_v15 = vadd.f32 %v846_v28, %v754_v13  ;;  %856 = sbr.rel (%p1004_p0) target bundleno = 565 (0x235), region = 68 }
 0x230   : > { %v850_v16 = vmax.f32 %v849_v15, 0.0 }
 0x232   : > { %851 = vst [vmem:[%s337_s17] sm:$0xff] %v850_v16 }
 0x233   : > { %v857_v17 = vld [vmem:[#allocation2 + $0xc] sm:$0xf]  ;;  %v859_v18 = vld [vmem:[#allocation3 + $0xc] sm:$0xf] }
 0x234   : > { %858 = vst [vmem:[#allocation2 + $0x4] sm:$0xf] %v857_v17  ;;  %860 = vst [vmem:[#allocation3 + $0x4] sm:$0xf] %v859_v18 }
 0x235 PF: > { %s1006_s20 = sshll.u32 %s1511_s28, 1  ;;  %s877_s11 = sshll.u32 %s337_s17, 4  ;;  %s878_s11 = int_to_ptr.vmem [resolvable:$true] %s877_s11 }
 0x236   : > { %s873_s10 = sadd.s32 %s1507_s27, %s1006_s20  ;;  %s862_s13 = scalar_lea.sflag [#allocation6], %s335_s30 }
 0x237   : > { %s1007_s18 = sshll.u32 %s873_s10, 7  ;;  %s1423_s14 = scalar_lea.vmem %s878_s11, 128 }
 0x238   : > { %s875_s19 = scalar_lea.hbm %s1853_s7, %s1007_s18  ;;  %p1424_p1 = scmp.ne.s32.totalorder %s878_s11, %s1423_s14 }
 0x239   : > { %s1533_s9 = smov [#allocation10]  }
 0x23a   : > { %p1425_p7 = pnand %p1424_p1, %p1626_p3  ;;  %s1427_s0 = sshll.u32 %s1533_s9, 4  ;;  %s1428_s0 = int_to_ptr.vmem [resolvable:$false] %s1427_s0 }
 0x23b   : > { %s1429_s28 = scalar_lea.vmem %s1428_s0, 256  ;;  %p1430_p11 = scmp.lt.s32.totalorder %s878_s11, %s1428_s0 }
 0x23c   : > { %p1426_p9 = pneg %p1425_p7  ;;  %p1431_p13 = scmp.lt.s32.totalorder %s1429_s28, %s1423_s14 }
 0x23e   : > { %p1432_p2 = por %p1431_p13, %p1430_p11 }
 0x240   : > { %p1433_p5 = pnand %p1432_p2, %p1426_p9 }
 0x242   : > { %1436 = shalt.err (!%p1433_p5)
}
 0x243   : > { %s1437_s27 = scalar_lea.hbm %s875_s19, 128  ;;  %s1441_s17 = scalar_lea.hbm %s1853_s7, 512 }
 0x244   : > { %p1438_p4 = scmp.ne.s32.totalorder %s875_s19, %s1437_s27  ;;  %p1442_p10 = scmp.lt.s32.totalorder %s875_s19, %s1853_s7 }
 0x245   : > { %p1443_p12 = scmp.lt.s32.totalorder %s1441_s17, %s1437_s27 }
 0x246   : > { %p1439_p6 = pnand %p1438_p4, %p1626_p3 }
 0x247   : > { %p1444_p0 = por %p1443_p12, %p1442_p10 }
 0x248   : > { %p1440_p8 = pneg %p1439_p6 }
 0x24a   : > { %p1445_p1 = pnand %p1444_p0, %p1440_p8 }
 0x24c   : > { %1448 = shalt.err (!%p1445_p1)
}
 0x24d   : > { %1248 = dma.vmem_to_hbm [thread:$0]  (%p1626_p3), %s878_s11, 128, %s875_s19, %s862_s13  }
 0x24e PF: > { %p1270_p7 = scmp.ge.s32.totalorder %s1523_s8, 2  ;;  %s889_s0 = sand.u32 1, %s1495_s24  }
 0x24f   : > { %p1867_p9 = scmp.ne.s32.totalorder %s1862_s16, 0  ;;  %s890_s18 = scalar_lea.sflag [#allocation6], %s889_s0 }
 0x251   : > { %p1261_p11 = pnand %p1270_p7, %p1867_p9 }
 0x253   : > { %p1262_p13 = pneg %p1261_p11 }
 0x255   : > { %1490 = dma.done.wait (%p1262_p13), %s890_s18, 128  }
 0x256   : > { %1492 = vsyncadd (%p1262_p13), %s890_s18, 4294967168  ;;  %s22_s8 = sadd.s32 1, %s1523_s8   ;;  %s1868_s28 = sld [smem:[#allocation14_spill]] }
 0x257   : > { %p19_p2 = scmp.ge.s32.totalorder %s22_s8, 6   ;;  %s1869_s15 = sld [smem:[#allocation15_spill]] }
 0x258   : > { %s1870_s30 = sld [smem:[#allocation16_spill]]  ;;  %s1871_s24 = smov %s1499_s25 }
 0x259   : > { %s1872_s25 = smov %s1503_s26  ;;  %s1873_s26 = smov %s1653_s21 }
 0x25a   : > { %s1874_s27 = smov %s1515_s29  ;;  %21 = sbr.rel (!%p19_p2) target bundleno = 9 (0x9), region = 104 }
 0x25d   : > { %s1875_s29 = smov %s1869_s15 }
 0x25f   :  { %895 = vsyncpa [#allocation5], 1 }
 0x260   :  { %897 = vsyncpa [#allocation5 + $0x1], 1 }
 0x261   :  { %898 = vsyncpa [#allocation8], 1 }
 0x262   :  { %899 = vsyncpa [#allocation6], 1 }
 0x263   :  { %901 = vsyncpa [#allocation6 + $0x1], 1 }

</bundles_post_ra>
